<compile_context>
chip_gen: v6e
topology: v6e:2x2x1
jax: 0.10.0
libtpu: 0.0.40
codegen_flags: <defaults>
</compile_context>

<pallas_src>
import functools

import jax
import jax.numpy as jnp
from jax.experimental import pallas as pl
from jax.experimental.pallas import tpu as pltpu

_BYTES_F32 = 4
_VMEM_LIMIT_BYTES = 48 * 1024 * 1024       # <= v7x's 64 MiB physical VMEM
_VMEM_BUDGET_BYTES = 40 * 1024 * 1024      # headroom under the limit
_WRES_MAX_WEIGHT_BYTES = 16 * 1024 * 1024  # weight-resident threshold (v7x safe)
_TM_MAX = 512


def _round_up(v, m):
    return ((v + m - 1) // m) * m


def _cdiv(a, b):
    return (a + b - 1) // b


# ---------------------------------------------------------------------------
# Kernels
# ---------------------------------------------------------------------------

def _wres_kernel(x_ref, wt_ref, o_ref):
    # Whole pre-transposed weight is VMEM-resident; single MXU pass per row
    # tile, written straight to the (f32) output block - no scratch, no K loop.
    o_ref[...] = jnp.dot(
        x_ref[...], wt_ref[...], preferred_element_type=jnp.float32
    ).astype(o_ref.dtype)


def _tiled_kernel(x_ref, wt_ref, o_ref):
    # Accumulate directly into the resident f32 output block (no acc scratch).
    @pl.when(pl.program_id(2) == 0)
    def _init():
        o_ref[...] = jnp.zeros_like(o_ref)

    o_ref[...] += jnp.dot(
        x_ref[...], wt_ref[...], preferred_element_type=jnp.float32
    )


# ---------------------------------------------------------------------------
# Weight-resident path (W fits in VMEM)
# ---------------------------------------------------------------------------

def _pick_row_tile(n, k, m):
    """Row-tile size (multiple of 8) for the weight-resident kernel."""
    tm = min(_TM_MAX, _round_up(n, 8))
    # Keep >= 2 row tiles for non-tiny batches so the "parallel" grid axis can
    # be sharded across both v7x TensorCores.
    if n > 256:
        tm = min(tm, _round_up(_cdiv(n, 2), 8))
    # Fit resident W + double-buffered x/out row tiles within the budget.
    budget = _VMEM_BUDGET_BYTES - 2 * k * m * _BYTES_F32
    per_row = 2 * (k + m) * _BYTES_F32
    while tm > 8 and tm * per_row > budget:
        tm = max(8, _round_up(tm // 2, 8))
    return tm


@functools.partial(jax.jit, static_argnames=("tm",))
def _linear_wres(x, wt, tm):
    """x: [N, K] f32, wt: [K, M] f32 (pre-transposed, unpadded) -> [N, M] f32."""
    n, k = x.shape
    _, m = wt.shape
    grid = (_cdiv(n, tm),)
    cost = pl.CostEstimate(
        flops=2 * n * k * m,
        transcendentals=0,
        bytes_accessed=_BYTES_F32 * (n * k + k * m + n * m),
    )
    return pl.pallas_call(
        _wres_kernel,
        out_shape=jax.ShapeDtypeStruct((n, m), jnp.float32),
        grid_spec=pltpu.PrefetchScalarGridSpec(
            num_scalar_prefetch=0,
            grid=grid,
            in_specs=[
                pl.BlockSpec((tm, k), lambda i: (i, 0)),   # stream x row tiles
                pl.BlockSpec((k, m), lambda i: (0, 0)),    # W resident in VMEM
            ],
            out_specs=pl.BlockSpec((tm, m), lambda i: (i, 0)),
        ),
        compiler_params=pltpu.CompilerParams(
            dimension_semantics=("parallel",),
            vmem_limit_bytes=_VMEM_LIMIT_BYTES,
        ),
        cost_estimate=cost,
    )(x, wt)


# ---------------------------------------------------------------------------
# K-tiled fallback path (W too large for VMEM residency)
# ---------------------------------------------------------------------------

def _tiled_dims(k, m):
    tk = min(1024, _round_up(k, 128))
    kp = _round_up(k, tk)
    tn = min(512, _round_up(m, 128))
    return tk, tn, kp


def prepare_weight_tiled(weight):
    """weight [M, K] -> transposed, K-zero-padded [Kp, M]. Hoisted (done once)."""
    m, k = weight.shape
    _, _, kp = _tiled_dims(k, m)
    return jnp.pad(weight.T, ((0, kp - k), (0, 0)))


@jax.jit
def _linear_tiled(x, wt_kp):
    """x: [N, K] f32, wt_kp: [Kp, M] f32 (pre-transposed, K-padded) -> [N, M]."""
    n, k = x.shape
    kp, m = wt_kp.shape
    tk, tn, kp_chk = _tiled_dims(k, m)
    assert kp == kp_chk and kp % tk == 0
    tm = min(_TM_MAX, _round_up(n, 8))
    if kp > k:
        # K remainder MUST be zero-padded (contraction dim); narrow pad only.
        x = jnp.pad(x, ((0, 0), (0, kp - k)))
    gi, gj, gk = _cdiv(n, tm), _cdiv(m, tn), kp // tk
    cost = pl.CostEstimate(
        flops=2 * n * kp * m,
        transcendentals=0,
        # Accounts for x re-reads per j tile and W re-reads per i tile.
        bytes_accessed=_BYTES_F32 * (n * kp * gj + kp * m * gi + n * m),
    )
    return pl.pallas_call(
        _tiled_kernel,
        out_shape=jax.ShapeDtypeStruct((n, m), jnp.float32),
        grid_spec=pltpu.PrefetchScalarGridSpec(
            num_scalar_prefetch=0,
            grid=(gi, gj, gk),
            in_specs=[
                pl.BlockSpec((tm, tk), lambda i, j, kk: (i, kk)),
                pl.BlockSpec((tk, tn), lambda i, j, kk: (kk, j)),
            ],
            out_specs=pl.BlockSpec((tm, tn), lambda i, j, kk: (i, j)),
        ),
        compiler_params=pltpu.CompilerParams(
            dimension_semantics=("parallel", "parallel", "arbitrary"),
            vmem_limit_bytes=_VMEM_LIMIT_BYTES,
        ),
        cost_estimate=cost,
    )(x, wt_kp)


# ---------------------------------------------------------------------------
# Module wrapper (matches torch semantics: bias-free Linear, weights = 0.001)
# ---------------------------------------------------------------------------

class LinearRegression:
    def __init__(self, in_features, out_features):
        self.in_features = in_features
        self.out_features = out_features
        # Deterministic init matching `self.layer.weight.data.fill_(0.001)`.
        self.weight = jnp.full((out_features, in_features), 0.001, jnp.float32)
        # Weight-stationary: transpose (and, if needed, K-pad) hoisted to init.
        self._wt = jnp.asarray(self.weight.T)                      # [K, M]
        w_bytes = in_features * out_features * _BYTES_F32
        self._weight_resident = w_bytes <= _WRES_MAX_WEIGHT_BYTES
        self._wt_tiled = (
            None if self._weight_resident else prepare_weight_tiled(self.weight)
        )

    def __call__(self, x):
        n, k = x.shape
        m = self.out_features
        # Tiny-problem fast path (e.g. the K=1 spec workload): below MXU tile
        # granularity the Pallas path is pure padding overhead; plain XLA dot
        # is strictly faster.
        # TODO(synk): for the spec's constant-0.001 weight this could reduce
        # further to 0.001 * x.sum(-1, keepdims=True) broadcast to out_features.
        if k < 128 or n * k * m < (1 << 18):
            return x @ self._wt
        if self._weight_resident:
            return _linear_wres(x, self._wt, _pick_row_tile(n, k, m))
        return _linear_tiled(x, self._wt_tiled)


# ---------------------------------------------------------------------------
# Self-test
# ---------------------------------------------------------------------------

if __name__ == "__main__":
    # 1) Exact torch-spec workload: n_features = 1, the given 1-D points.
    n_features = 1
    x_spec = jnp.array(
        [[-2.0], [-1.0], [0.0], [1.0], [2.0], [3.0],
         [4.0], [5.0], [6.0], [7.0], [8.0]], dtype=jnp.float32)
    model = LinearRegression(n_features, n_features)
    y_spec = jax.block_until_ready(model(x_spec))
    y_spec_ref = x_spec @ model.weight.T
    assert y_spec.shape == (11, 1), y_spec.shape
    assert jnp.allclose(y_spec, y_spec_ref, atol=1e-6)

    # 2) Weight-resident Pallas kernel (hot path for real Linear shapes),
    #    small shape with a row remainder (270 -> two 136-row tiles).
    key = jax.random.PRNGKey(0)
    kx1, kx2, kw = jax.random.split(key, 3)
    n, k, m = 270, 200, 136
    model2 = LinearRegression(k, m)
    x2 = jax.random.normal(kx1, (n, k), dtype=jnp.float32)
    y2 = jax.block_until_ready(model2(x2))
    y2_ref = jnp.dot(x2, model2.weight.T, precision=jax.lax.Precision.HIGHEST)
    assert y2.shape == (n, m), y2.shape
    assert jnp.allclose(y2, y2_ref, atol=1e-4, rtol=1e-4)

    # 2b) Same kernel with a random (non-constant) weight for a stronger check.
    w_rand = jax.random.normal(kw, (m, k), dtype=jnp.float32) * 0.02
    y2b = jax.block_until_ready(
        _linear_wres(x2, w_rand.T, _pick_row_tile(n, k, m)))
    y2b_ref = jnp.dot(x2, w_rand.T, precision=jax.lax.Precision.HIGHEST)
    assert jnp.allclose(y2b, y2b_ref, atol=2e-3, rtol=2e-3)

    # 3) K-tiled fallback kernel (used only when W can't stay VMEM-resident):
    #    forced here on a small shape with 2 K steps, K remainder padding and
    #    a partial output column tile.
    n3, k3, m3 = 136, 1536, 640
    x3 = jax.random.normal(kx2, (n3, k3), dtype=jnp.float32)
    kw3 = jax.random.split(kw, 1)[0]
    w3 = jax.random.normal(kw3, (m3, k3), dtype=jnp.float32) * 0.02
    y3 = jax.block_until_ready(_linear_tiled(x3, prepare_weight_tiled(w3)))
    y3_ref = jnp.dot(x3, w3.T, precision=jax.lax.Precision.HIGHEST)
    assert y3.shape == (n3, m3), y3.shape
    assert jnp.allclose(y3, y3_ref, atol=3e-3, rtol=3e-3)

    print("KERNEL_OK")
</pallas_src>

<mosaic_0001>
module attributes {stable_mosaic.version = 11 : i64} {
  func.func @_wres_kernel(%arg0: i32, %arg1: memref<136x200xf32, #tpu.memory_space<vmem>>, %arg2: memref<200x136xf32, #tpu.memory_space<vmem>>, %arg3: memref<136x136xf32, #tpu.memory_space<vmem>>) attributes {dimension_semantics = [#tpu.dimension_semantics<parallel>], iteration_bounds = array<i64: 2>, scalar_prefetch = 0 : i64, scratch_operands = 0 : i64, tpu.core_type = #tpu.core_type<tc>, window_params = [{transform_indices = @transform_0, window_bounds = array<i64: 136, 200>}, {pipeline_mode = #tpu.pipeline_mode<synchronous>, transform_indices = @transform_1, window_bounds = array<i64: 200, 136>}, {transform_indices = @transform_2, window_bounds = array<i64: 136, 136>}]} {
    %c0 = arith.constant 0 : index
    %c0_0 = arith.constant 0 : index
    %0 = vector.load %arg1[%c0, %c0_0] : memref<136x200xf32, #tpu.memory_space<vmem>>, vector<136x200xf32>
    %c0_1 = arith.constant 0 : index
    %c0_2 = arith.constant 0 : index
    %1 = vector.load %arg2[%c0_1, %c0_2] : memref<200x136xf32, #tpu.memory_space<vmem>>, vector<200x136xf32>
    %cst = arith.constant dense<0.000000e+00> : vector<136x136xf32>
    %2 = tpu.matmul %0, %1, %cst {dimension_numbers = #tpu.dot_dimension_numbers<[1], [0], [0], [1], [0, 0, 1, 1], [], []>} : vector<136x200xf32>, vector<200x136xf32>, vector<136x136xf32> -> vector<136x136xf32>
    %c0_3 = arith.constant 0 : index
    %c0_4 = arith.constant 0 : index
    %3 = vector.load %arg3[%c0_3, %c0_4] : memref<136x136xf32, #tpu.memory_space<vmem>>, vector<136x136xf32>
    tpu.vector_store %arg3[%c0_3, %c0_4], %2 {strides = array<i32>} : memref<136x136xf32, #tpu.memory_space<vmem>>, vector<136x136xf32>,
    return
  }
  func.func @transform_0(%arg0: i32) -> (i32, i32) {
    %c0_i32 = arith.constant 0 : i32
    %c0_i32_0 = arith.constant 0 : i32
    return %arg0, %c0_i32 : i32, i32
  }
  func.func @transform_1(%arg0: i32) -> (i32, i32) {
    %c0_i32 = arith.constant 0 : i32
    %c0_i32_0 = arith.constant 0 : i32
    %c0_i32_1 = arith.constant 0 : i32
    return %c0_i32, %c0_i32_0 : i32, i32
  }
  func.func @transform_2(%arg0: i32) -> (i32, i32) {
    %c0_i32 = arith.constant 0 : i32
    %c0_i32_0 = arith.constant 0 : i32
    return %arg0, %c0_i32 : i32, i32
  }
}

</mosaic_0001>

<bundles_post_ra>
// kernel: _linear_wres.1
= control target key start
LH: loop header
LB: loop body
LE: loop exit
PB: predicated region body
PF: predicated region fallthrough
CT: control target
= control target key end

     0   :  { %s659_s9 = smov 0   ;;  %s941_s0 = inlined_call_operand.vmem [shape: f32[270,200], index: 0, kind: input, shape index: {}]   ;;  %s942_s1 = inlined_call_operand.vmem [shape: f32[200,136], index: 1, kind: input, shape index: {}]   ;;  %s943_s2 = inlined_call_operand.vmem [shape: f32[270,136], index: 2, kind: output, shape index: {}]  }
   0x1 LB: > { %s548_s10 = sadd.s32 4294967295, %s642_s9   ;;  %p552_p0 = scmp.ge.s32.totalorder %s642_s9, 1  ;;  %s642_s9 = sphi %s659_s9, %s12_s9  }
   0x2   : > { %p114_p1 = scmp.lt.s32.totalorder %s642_s9, 3 }
   0x4   : > { %p115_p2 = pnand %p552_p0, %p114_p1 }
   0x5   : > { %s138_s21 = smul.u32 (!%p115_p2), 17, %s548_s10 }
   0x6   : > { %118 = sbr.rel (%p115_p2) target bundleno = 290 (0x122), region = 28 }
   0x7   : > { %p139_p3 = scmp.lt.s32.totalorder (!%p115_p2), %s138_s21, 33 }
   0xb   : > { %v217_v0 = vld [vmem:[%s942_s1 + $0xf8] sm:$0xff]  ;;  %v216_v1 = vld [vmem:[%s942_s1 + $0xf0] sm:$0xff]  ;;  %v215_v2 = vld [vmem:[%s942_s1 + $0xe8] sm:$0xff]  ;;  %s945_s21 = smov (!%p139_p3, %s138_s21), 33  ;;  %vm236_vm0 = vcmask 588800   ;;  %vm456_vm1 = vcmask 64512  }
   0xc   : > { %288 = vmatprep.subr.mxu0 %v217_v0  ;;  %578 = vmatprep.subr.mxu1 %v217_v0  ;;  %v214_v3 = vld [vmem:[%s942_s1 + $0xe0] sm:$0xff]  ;;  %v213_v4 = vld [vmem:[%s942_s1 + $0xd8] sm:$0xff]  ;;  %v212_v5 = vld [vmem:[%s942_s1 + $0xd0] sm:$0xff]  ;;  %s576_s19 = sshll.u32 %s945_s21, 4 }
   0xd   : > { %289 = vmatpush1.msra.mxu0 %v216_v1  ;;  %603 = vmatpush1.msra.mxu1 %v216_v1  ;;  %v211_v6 = vld [vmem:[%s942_s1 + $0xc8] sm:$0xff]  ;;  %v210_v7 = vld [vmem:[%s942_s1 + $0xc0] sm:$0xff]  ;;  %v209_v8 = vld [vmem:[%s942_s1 + $0xb8] sm:$0xff]  ;;  %s815_s28 = scalar_lea.vmem %s941_s0, %s576_s19  ;;  %s885_s13 = scalar_lea.vmem %s943_s2, %s576_s19 }
   0xe   : > { %290 = vmatprep.subr.mxu0 %v215_v2  ;;  %579 = vmatprep.subr.mxu1 %v215_v2  ;;  %v208_v9 = vld [vmem:[%s942_s1 + $0xb0] sm:$0xff]  ;;  %v207_v10 = vld [vmem:[%s942_s1 + $0xa8] sm:$0xff]  ;;  %v206_v11 = vld [vmem:[%s942_s1 + $0xa0] sm:$0xff] }
   0xf   : > { %291 = vmatpush1.msra.mxu0 %v214_v3  ;;  %604 = vmatpush1.msra.mxu1 %v214_v3  ;;  %v205_v12 = vld [vmem:[%s942_s1 + $0x98] sm:$0xff]  ;;  %v204_v13 = vld [vmem:[%s942_s1 + $0x90] sm:$0xff]  ;;  %v203_v14 = vld [vmem:[%s942_s1 + $0x88] sm:$0xff] }
  0x10   : > { %292 = vmatprep.subr.mxu0 %v213_v4  ;;  %580 = vmatprep.subr.mxu1 %v213_v4  ;;  %v202_v15 = vld [vmem:[%s942_s1 + $0x80] sm:$0xff]  ;;  %v201_v16 = vld [vmem:[%s942_s1 + $0x78] sm:$0xff]  ;;  %v200_v17 = vld [vmem:[%s942_s1 + $0x70] sm:$0xff] }
  0x11   : > { %293 = vmatpush1.msra.mxu0 %v212_v5  ;;  %605 = vmatpush1.msra.mxu1 %v212_v5  ;;  %v199_v18 = vld [vmem:[%s942_s1 + $0x68] sm:$0xff]  ;;  %v198_v19 = vld [vmem:[%s942_s1 + $0x60] sm:$0xff]  ;;  %v197_v20 = vld [vmem:[%s942_s1 + $0x58] sm:$0xff] }
  0x12   : > { %294 = vmatprep.subr.mxu0 %v211_v6  ;;  %581 = vmatprep.subr.mxu1 %v211_v6  ;;  %v196_v21 = vld [vmem:[%s942_s1 + $0x50] sm:$0xff]  ;;  %v195_v22 = vld [vmem:[%s942_s1 + $0x48] sm:$0xff]  ;;  %v194_v23 = vld [vmem:[%s942_s1 + $0x40] sm:$0xff] }
  0x13   : > { %295 = vmatpush1.msra.mxu0 %v210_v7  ;;  %606 = vmatpush1.msra.mxu1 %v210_v7  ;;  %v193_v24 = vld [vmem:[%s942_s1 + $0x38] sm:$0xff]  ;;  %v192_v25 = vld [vmem:[%s942_s1 + $0x30] sm:$0xff]  ;;  %v191_v26 = vld [vmem:[%s942_s1 + $0x28] sm:$0xff] }
  0x14   : > { %296 = vmatprep.subr.mxu0 %v209_v8  ;;  %582 = vmatprep.subr.mxu1 %v209_v8  ;;  %v190_v27 = vld [vmem:[%s942_s1 + $0x20] sm:$0xff]  ;;  %v189_v28 = vld [vmem:[%s942_s1 + $0x18] sm:$0xff]  ;;  %v188_v29 = vld [vmem:[%s942_s1 + $0x10] sm:$0xff] }
  0x15   : > { %297 = vmatpush1.msra.mxu0 %v208_v9  ;;  %607 = vmatpush1.msra.mxu1 %v208_v9  ;;  %v187_v30 = vld [vmem:[%s942_s1 + $0x8] sm:$0xff]  ;;  %v186_v31 = vld [vmem:[%s942_s1] sm:$0xff]  ;;  %v233_v34 = vld [vmem:[%s942_s1 + $0x178] sm:$0xff] }
  0x16   : > { %298 = vmatprep.subr.mxu0 %v207_v10  ;;  %583 = vmatprep.subr.mxu1 %v207_v10  ;;  %v235_v32 = vld [vmem:[%s942_s1 + $0x188] sm:$0xff]  ;;  %v234_v33 = vld [vmem:[%s942_s1 + $0x180] sm:$0xff]  ;;  %v232_v35 = vld [vmem:[%s942_s1 + $0x170] sm:$0xff] }
  0x17   : > { %299 = vmatpush1.msra.mxu0 %v206_v11  ;;  %608 = vmatpush1.msra.mxu1 %v206_v11  ;;  %v231_v36 = vld [vmem:[%s942_s1 + $0x168] sm:$0xff]  ;;  %v230_v37 = vld [vmem:[%s942_s1 + $0x160] sm:$0xff]  ;;  %v229_v38 = vld [vmem:[%s942_s1 + $0x158] sm:$0xff] }
  0x18   : > { %300 = vmatprep.subr.mxu0 %v205_v12  ;;  %584 = vmatprep.subr.mxu1 %v205_v12  ;;  %v228_v39 = vld [vmem:[%s942_s1 + $0x150] sm:$0xff]  ;;  %v227_v40 = vld [vmem:[%s942_s1 + $0x148] sm:$0xff]  ;;  %v226_v41 = vld [vmem:[%s942_s1 + $0x140] sm:$0xff] }
  0x19   : > { %301 = vmatpush1.msra.mxu0 %v204_v13  ;;  %609 = vmatpush1.msra.mxu1 %v204_v13  ;;  %v225_v42 = vld [vmem:[%s942_s1 + $0x138] sm:$0xff]  ;;  %v224_v43 = vld [vmem:[%s942_s1 + $0x130] sm:$0xff]  ;;  %v223_v44 = vld [vmem:[%s942_s1 + $0x128] sm:$0xff] }
  0x1a   : > { %302 = vmatprep.subr.mxu0 %v203_v14  ;;  %585 = vmatprep.subr.mxu1 %v203_v14  ;;  %v222_v45 = vld [vmem:[%s942_s1 + $0x120] sm:$0xff]  ;;  %v221_v46 = vld [vmem:[%s942_s1 + $0x118] sm:$0xff]  ;;  %v220_v47 = vld [vmem:[%s942_s1 + $0x110] sm:$0xff] }
  0x1b   : > { %303 = vmatpush1.msra.mxu0 %v202_v15  ;;  %610 = vmatpush1.msra.mxu1 %v202_v15  ;;  %v219_v48 = vld [vmem:[%s942_s1 + $0x108] sm:$0xff]  ;;  %v218_v50 = vld [vmem:[%s942_s1 + $0x100] sm:$0xff]  ;;  %v171_v52 = vld [vmem:[%s815_s28 + $0x98] sm:$0xff] }
  0x1c   : > { %304 = vmatprep.subr.mxu0 %v201_v16  ;;  %586 = vmatprep.subr.mxu1 %v201_v16  ;;  %v153_v49 = vld [vmem:[%s815_s28 + $0x8] sm:$0xff]  ;;  %v152_v51 = vld [vmem:[%s815_s28] sm:$0xff]  ;;  %v155_v53 = vld [vmem:[%s815_s28 + $0x18] sm:$0xff] }
  0x1d   : > { %305 = vmatpush1.msra.mxu0 %v200_v17  ;;  %611 = vmatpush1.msra.mxu1 %v200_v17  ;;  %v170_v54 = vld [vmem:[%s815_s28 + $0x90] sm:$0xff]  ;;  %v173_v55 = vld [vmem:[%s815_s28 + $0xa8] sm:$0xff]  ;;  %v172_v58 = vld [vmem:[%s815_s28 + $0xa0] sm:$0xff] }
  0x1e   : > { %306 = vmatprep.subr.mxu0 %v199_v18  ;;  %587 = vmatprep.subr.mxu1 %v199_v18  ;;  %v154_v56 = vld [vmem:[%s815_s28 + $0x10] sm:$0xff]  ;;  %v157_v57 = vld [vmem:[%s815_s28 + $0x28] sm:$0xff]  ;;  %v175_v59 = vld [vmem:[%s815_s28 + $0xb8] sm:$0xff] }
  0x1f   : > { %307 = vmatpush1.msra.mxu0 %v198_v19  ;;  %612 = vmatpush1.msra.mxu1 %v198_v19  ;;  %v156_v60 = vld [vmem:[%s815_s28 + $0x20] sm:$0xff]  ;;  %v159_v61 = vld [vmem:[%s815_s28 + $0x38] sm:$0xff]  ;;  %v174_v62 = vld [vmem:[%s815_s28 + $0xb0] sm:$0xff] }
  0x20   : > { %308 = vmatprep.subr.mxu0 %v197_v20  ;;  %588 = vmatprep.subr.mxu1 %v197_v20  ;;  %v177_v63 = vld [vmem:[%s815_s28 + $0xc8] sm:$0xff]  ;;  %v158_v0 = vld [vmem:[%s815_s28 + $0x30] sm:$0xff]  ;;  %v176_v2 = vld [vmem:[%s815_s28 + $0xc0] sm:$0xff] }
  0x21   : > { %309 = vmatpush1.msra.mxu0 %v196_v21  ;;  %613 = vmatpush1.msra.mxu1 %v196_v21  ;;  %v161_v1 = vld [vmem:[%s815_s28 + $0x48] sm:$0xff]  ;;  %v179_v3 = vld [vmem:[%s815_s28 + $0xd8] sm:$0xff]  ;;  %v160_v4 = vld [vmem:[%s815_s28 + $0x40] sm:$0xff] }
  0x22   : > { %310 = vmatprep.subr.mxu0 %v195_v22  ;;  %589 = vmatprep.subr.mxu1 %v195_v22  ;;  %v163_v5 = vld [vmem:[%s815_s28 + $0x58] sm:$0xff]  ;;  %v178_v6 = vld [vmem:[%s815_s28 + $0xd0] sm:$0xff]  ;;  %v181_v7 = vld [vmem:[%s815_s28 + $0xe8] sm:$0xff] }
  0x23   : > { %311 = vmatpush1.msra.mxu0 %v194_v23  ;;  %614 = vmatpush1.msra.mxu1 %v194_v23  ;;  %v162_v8 = vld [vmem:[%s815_s28 + $0x50] sm:$0xff]  ;;  %v165_v9 = vld [vmem:[%s815_s28 + $0x68] sm:$0xff]  ;;  %v180_v10 = vld [vmem:[%s815_s28 + $0xe0] sm:$0xff] }
  0x24   : > { %312 = vmatprep.subr.mxu0 %v193_v24  ;;  %590 = vmatprep.subr.mxu1 %v193_v24  ;;  %v183_v11 = vld [vmem:[%s815_s28 + $0xf8] sm:$0xff]  ;;  %v164_v12 = vld [vmem:[%s815_s28 + $0x60] sm:$0xff]  ;;  %v182_v14 = vld [vmem:[%s815_s28 + $0xf0] sm:$0xff] }
  0x25   : > { %313 = vmatpush1.msra.mxu0 %v192_v25  ;;  %615 = vmatpush1.msra.mxu1 %v192_v25  ;;  %v167_v13 = vld [vmem:[%s815_s28 + $0x78] sm:$0xff]  ;;  %v185_v15 = vld [vmem:[%s815_s28 + $0x108] sm:$0xff]  ;;  %v166_v16 = vld [vmem:[%s815_s28 + $0x70] sm:$0xff] }
  0x26   : > { %314 = vmatprep.subr.mxu0 %v191_v26  ;;  %591 = vmatprep.subr.mxu1 %v191_v26  ;;  %v169_v17 = vld [vmem:[%s815_s28 + $0x88] sm:$0xff]  ;;  %v184_v18 = vld [vmem:[%s815_s28 + $0x100] sm:$0xff] }
  0x27   : > { %315 = vmatpush1.msra.mxu0 %v190_v27  ;;  %616 = vmatpush1.msra.mxu1 %v190_v27  ;;  %v168_v19 = vld [vmem:[%s815_s28 + $0x80] sm:$0xff] }
  0x28   : > { %316 = vmatprep.subr.mxu0 %v189_v28  ;;  %592 = vmatprep.subr.mxu1 %v189_v28 }
  0x29   : > { %317 = vmatpush1.msra.mxu0 %v188_v29  ;;  %617 = vmatpush1.msra.mxu1 %v188_v29 }
  0x2a   : > { %318 = vmatprep.subr.mxu0 %v187_v30  ;;  %593 = vmatprep.subr.mxu1 %v187_v30 }
  0x2b   : > { %319 = vmatpush1.msra.mxu0 %v186_v31  ;;  %618 = vmatpush1.msra.mxu1 %v186_v31 }
  0x2c   : > { %334 = vmatprep.subr.mxu0 %v235_v32  ;;  %594 = vmatprep.subr.mxu1 %v235_v32 }
  0x2d   : > { %335 = vmatpush2.msra.mxu0 %v234_v33  ;;  %619 = vmatpush2.msra.mxu1 %v234_v33 }
  0x2e   : > { %336 = vmatprep.subr.mxu0 %v233_v34  ;;  %595 = vmatprep.subr.mxu1 %v233_v34 }
  0x2f   : > { %337 = vmatpush2.msra.mxu0 %v232_v35  ;;  %620 = vmatpush2.msra.mxu1 %v232_v35 }
  0x30   : > { %338 = vmatprep.subr.mxu0 %v231_v36  ;;  %596 = vmatprep.subr.mxu1 %v231_v36 }
  0x31   : > { %339 = vmatpush2.msra.mxu0 %v230_v37  ;;  %621 = vmatpush2.msra.mxu1 %v230_v37 }
  0x32   : > { %340 = vmatprep.subr.mxu0 %v229_v38  ;;  %597 = vmatprep.subr.mxu1 %v229_v38 }
  0x33   : > { %341 = vmatpush2.msra.mxu0 %v228_v39  ;;  %622 = vmatpush2.msra.mxu1 %v228_v39 }
  0x34   : > { %342 = vmatprep.subr.mxu0 %v227_v40  ;;  %598 = vmatprep.subr.mxu1 %v227_v40 }
  0x35   : > { %343 = vmatpush2.msra.mxu0 %v226_v41  ;;  %623 = vmatpush2.msra.mxu1 %v226_v41 }
  0x36   : > { %344 = vmatprep.subr.mxu0 %v225_v42  ;;  %599 = vmatprep.subr.mxu1 %v225_v42 }
  0x37   : > { %345 = vmatpush2.msra.mxu0 %v224_v43  ;;  %624 = vmatpush2.msra.mxu1 %v224_v43 }
  0x38   : > { %346 = vmatprep.subr.mxu0 %v223_v44  ;;  %600 = vmatprep.subr.mxu1 %v223_v44 }
  0x39   : > { %347 = vmatpush2.msra.mxu0 %v222_v45  ;;  %625 = vmatpush2.msra.mxu1 %v222_v45 }
  0x3a   : > { %348 = vmatprep.subr.mxu0 %v221_v46  ;;  %601 = vmatprep.subr.mxu1 %v221_v46 }
  0x3b   : > { %349 = vmatpush2.msra.mxu0 %v220_v47  ;;  %626 = vmatpush2.msra.mxu1 %v220_v47 }
  0x3c   : > { %350 = vmatprep.subr.mxu0 %v219_v48  ;;  %557 = vmatprep.mubr.msk.f32.mxu0 %vm236_vm0, %v153_v49 }
  0x3d   : > { %351 = vmatpush2.msra.mxu0 %v218_v50  ;;  %602 = vmatprep.subr.mxu1 %v219_v48 }
  0x3e   : > { %353 = vmatmul.mubr.f32.vlgmr.msra.gmra.mxu0 %v152_v51  ;;  %627 = vmatpush2.msra.mxu1 %v218_v50 }
  0x3f   : > { %566 = vmatprep.mubr.msk.f32.mxu1 %vm236_vm0, %v171_v52  ;;  %558 = vmatprep.mubr.msk.f32.mxu0 %vm236_vm0, %v155_v53 }
  0x40   : > { %407 = vmatmul.mubr.f32.vlgmr.msra.gmra.mxu1 %v170_v54 }
  0x41   : > { %567 = vmatprep.mubr.msk.f32.mxu1 %vm236_vm0, %v173_v55 }
  0x42   : > { %359 = vmatmul.mubr.f32.gmra.mxu0 %v154_v56 }
  0x43   : > { %559 = vmatprep.mubr.msk.f32.mxu0 %vm236_vm0, %v157_v57 }
  0x44   : > { %413 = vmatmul.mubr.f32.gmra.mxu1 %v172_v58 }
  0x45   : > { %568 = vmatprep.mubr.msk.f32.mxu1 %vm236_vm0, %v175_v59 }
  0x46   : > { %365 = vmatmul.mubr.f32.gmra.mxu0 %v156_v60 }
  0x47   : > { %560 = vmatprep.mubr.msk.f32.mxu0 %vm236_vm0, %v159_v61 }
  0x48   : > { %419 = vmatmul.mubr.f32.gmra.mxu1 %v174_v62 }
  0x49   : > { %569 = vmatprep.mubr.msk.f32.mxu1 %vm236_vm0, %v177_v63 }
  0x4a   : > { %371 = vmatmul.mubr.f32.gmra.mxu0 %v158_v0 }
  0x4b   : > { %561 = vmatprep.mubr.msk.f32.mxu0 %vm236_vm0, %v161_v1 }
  0x4c   : > { %425 = vmatmul.mubr.f32.gmra.mxu1 %v176_v2 }
  0x4d   : > { %570 = vmatprep.mubr.msk.f32.mxu1 %vm236_vm0, %v179_v3 }
  0x4e   : > { %377 = vmatmul.mubr.f32.gmra.mxu0 %v160_v4 }
  0x4f   : > { %562 = vmatprep.mubr.msk.f32.mxu0 %vm236_vm0, %v163_v5 }
  0x50   : > { %431 = vmatmul.mubr.f32.gmra.mxu1 %v178_v6 }
  0x51   : > { %571 = vmatprep.mubr.msk.f32.mxu1 %vm236_vm0, %v181_v7 }
  0x52   : > { %383 = vmatmul.mubr.f32.gmra.mxu0 %v162_v8 }
  0x53   : > { %563 = vmatprep.mubr.msk.f32.mxu0 %vm236_vm0, %v165_v9 }
  0x54   : > { %437 = vmatmul.mubr.f32.gmra.mxu1 %v180_v10 }
  0x55   : > { %572 = vmatprep.mubr.msk.f32.mxu1 %vm236_vm0, %v183_v11 }
  0x56   : > { %389 = vmatmul.mubr.f32.gmra.mxu0 %v164_v12 }
  0x57   : > { %564 = vmatprep.mubr.msk.f32.mxu0 %vm236_vm0, %v167_v13 }
  0x58   : > { %443 = vmatmul.mubr.f32.gmra.mxu1 %v182_v14 }
  0x59   : > { %573 = vmatprep.mubr.msk.f32.mxu1 %vm236_vm0, %v185_v15 }
  0x5a   : > { %395 = vmatmul.mubr.f32.gmra.mxu0 %v166_v16 }
  0x5b   : > { %565 = vmatprep.mubr.msk.f32.mxu0 %vm236_vm0, %v169_v17 }
  0x5c   : > { %449 = vmatmul.mubr.f32.gmra.mxu1 %v184_v18 }
  0x5e   : > { %401 = vmatmul.mubr.f32.gmra.mxu0 %v168_v19 }
  0xfe   : > { %v354_v20 = vpop.f32.mrf.mxu0 }
  0xff   : > { %455 = vst [vmem:[%s885_s13] sm:$0xff] %v354_v20 }
 0x100   : > { %v356_v21 = vpop.f32.mrf.mxu0  ;;  %v408_v22 = vpop.f32.mrf.mxu1 }
 0x101   : > { %457 = vst.msk [vmem:[%s885_s13 + $0x8] sm:$0xff] %vm456_vm1, %v356_v21  ;;  %474 = vst [vmem:[%s885_s13 + $0x90] sm:$0xff] %v408_v22 }
 0x102   : > { %v360_v23 = vpop.f32.mrf.mxu0  ;;  %v410_v24 = vpop.f32.mrf.mxu1 }
 0x103   : > { %458 = vst [vmem:[%s885_s13 + $0x10] sm:$0xff] %v360_v23  ;;  %475 = vst.msk [vmem:[%s885_s13 + $0x98] sm:$0xff] %vm456_vm1, %v410_v24 }
 0x104   : > { %v362_v25 = vpop.f32.mrf.mxu0  ;;  %v414_v26 = vpop.f32.mrf.mxu1 }
 0x105   : > { %459 = vst.msk [vmem:[%s885_s13 + $0x18] sm:$0xff] %vm456_vm1, %v362_v25  ;;  %476 = vst [vmem:[%s885_s13 + $0xa0] sm:$0xff] %v414_v26 }
 0x106   : > { %v366_v27 = vpop.f32.mrf.mxu0  ;;  %v416_v28 = vpop.f32.mrf.mxu1 }
 0x107   : > { %460 = vst [vmem:[%s885_s13 + $0x20] sm:$0xff] %v366_v27  ;;  %477 = vst.msk [vmem:[%s885_s13 + $0xa8] sm:$0xff] %vm456_vm1, %v416_v28 }
 0x108   : > { %v368_v29 = vpop.f32.mrf.mxu0  ;;  %v420_v30 = vpop.f32.mrf.mxu1 }
 0x109   : > { %461 = vst.msk [vmem:[%s885_s13 + $0x28] sm:$0xff] %vm456_vm1, %v368_v29  ;;  %478 = vst [vmem:[%s885_s13 + $0xb0] sm:$0xff] %v420_v30 }
 0x10a   : > { %v372_v31 = vpop.f32.mrf.mxu0  ;;  %v422_v32 = vpop.f32.mrf.mxu1 }
 0x10b   : > { %462 = vst [vmem:[%s885_s13 + $0x30] sm:$0xff] %v372_v31  ;;  %479 = vst.msk [vmem:[%s885_s13 + $0xb8] sm:$0xff] %vm456_vm1, %v422_v32 }
 0x10c   : > { %v374_v33 = vpop.f32.mrf.mxu0  ;;  %v426_v34 = vpop.f32.mrf.mxu1 }
 0x10d   : > { %463 = vst.msk [vmem:[%s885_s13 + $0x38] sm:$0xff] %vm456_vm1, %v374_v33  ;;  %480 = vst [vmem:[%s885_s13 + $0xc0] sm:$0xff] %v426_v34 }
 0x10e   : > { %v378_v35 = vpop.f32.mrf.mxu0  ;;  %v428_v36 = vpop.f32.mrf.mxu1 }
 0x10f   : > { %464 = vst [vmem:[%s885_s13 + $0x40] sm:$0xff] %v378_v35  ;;  %481 = vst.msk [vmem:[%s885_s13 + $0xc8] sm:$0xff] %vm456_vm1, %v428_v36 }
 0x110   : > { %v380_v37 = vpop.f32.mrf.mxu0  ;;  %v432_v38 = vpop.f32.mrf.mxu1 }
 0x111   : > { %465 = vst.msk [vmem:[%s885_s13 + $0x48] sm:$0xff] %vm456_vm1, %v380_v37  ;;  %482 = vst [vmem:[%s885_s13 + $0xd0] sm:$0xff] %v432_v38 }
 0x112   : > { %v384_v39 = vpop.f32.mrf.mxu0  ;;  %v434_v40 = vpop.f32.mrf.mxu1 }
 0x113   : > { %466 = vst [vmem:[%s885_s13 + $0x50] sm:$0xff] %v384_v39  ;;  %483 = vst.msk [vmem:[%s885_s13 + $0xd8] sm:$0xff] %vm456_vm1, %v434_v40 }
 0x114   : > { %v386_v41 = vpop.f32.mrf.mxu0  ;;  %v438_v42 = vpop.f32.mrf.mxu1 }
 0x115   : > { %467 = vst.msk [vmem:[%s885_s13 + $0x58] sm:$0xff] %vm456_vm1, %v386_v41  ;;  %484 = vst [vmem:[%s885_s13 + $0xe0] sm:$0xff] %v438_v42 }
 0x116   : > { %v390_v43 = vpop.f32.mrf.mxu0  ;;  %v440_v44 = vpop.f32.mrf.mxu1 }
 0x117   : > { %468 = vst [vmem:[%s885_s13 + $0x60] sm:$0xff] %v390_v43  ;;  %485 = vst.msk [vmem:[%s885_s13 + $0xe8] sm:$0xff] %vm456_vm1, %v440_v44 }
 0x118   : > { %v392_v45 = vpop.f32.mrf.mxu0  ;;  %v444_v46 = vpop.f32.mrf.mxu1 }
 0x119   : > { %469 = vst.msk [vmem:[%s885_s13 + $0x68] sm:$0xff] %vm456_vm1, %v392_v45  ;;  %486 = vst [vmem:[%s885_s13 + $0xf0] sm:$0xff] %v444_v46 }
 0x11a   : > { %v396_v47 = vpop.f32.mrf.mxu0  ;;  %v446_v48 = vpop.f32.mrf.mxu1 }
 0x11b   : > { %470 = vst [vmem:[%s885_s13 + $0x70] sm:$0xff] %v396_v47  ;;  %487 = vst.msk [vmem:[%s885_s13 + $0xf8] sm:$0xff] %vm456_vm1, %v446_v48 }
 0x11c   : > { %v398_v49 = vpop.f32.mrf.mxu0  ;;  %v450_v50 = vpop.f32.mrf.mxu1 }
 0x11d   : > { %471 = vst.msk [vmem:[%s885_s13 + $0x78] sm:$0xff] %vm456_vm1, %v398_v49  ;;  %488 = vst [vmem:[%s885_s13 + $0x100] sm:$0xff] %v450_v50 }
 0x11e   : > { %v402_v51 = vpop.f32.mrf.mxu0  ;;  %v452_v52 = vpop.f32.mrf.mxu1 }
 0x11f   : > { %472 = vst [vmem:[%s885_s13 + $0x80] sm:$0xff] %v402_v51  ;;  %489 = vst.msk [vmem:[%s885_s13 + $0x108] sm:$0xff] %vm456_vm1, %v452_v52 }
 0x120   : > { %v404_v53 = vpop.f32.mrf.mxu0 }
 0x121   : > { %473 = vst.msk [vmem:[%s885_s13 + $0x88] sm:$0xff] %vm456_vm1, %v404_v53 }
 0x122 PF: > { %s12_s9 = sadd.s32 1, %s642_s9  }
 0x123   : > { %p9_p4 = scmp.ge.s32.totalorder %s12_s9, 4  }
 0x125   :  { %11 = sbr.rel (!%p9_p4) target bundleno = 1 (0x1), region = 58 }

</bundles_post_ra>
